<compile_context>
chip_gen: v6e
topology: v6e:2x2x1
jax: 0.10.0
libtpu: 0.0.40
codegen_flags: <defaults>
</compile_context>

<pallas_src>
import functools
import math

import jax
import jax.numpy as jnp
import numpy as np
from jax.experimental import pallas as pl
from jax.experimental.pallas import tpu as pltpu


# ----------------------------------------------------------------------------
# helpers
# ----------------------------------------------------------------------------
def _layer_norm(h, g, b, eps=1e-5):
    mu = jnp.mean(h, axis=-1, keepdims=True)
    var = jnp.mean((h - mu) ** 2, axis=-1, keepdims=True)
    return (h - mu) * jax.lax.rsqrt(var + eps) * g + b


def _pick_tile(n, preferred, quantum):
    """Largest multiple of `quantum` that divides n and is <= preferred (or n).

    Note: falls back to the full dimension if nothing divides cleanly (fine for
    the power-of-two-ish L / Dff used here; a full-dim block at pathological
    sizes could exceed the VMEM budget).
    """
    if n <= preferred:
        return n
    t = (preferred // quantum) * quantum
    while t >= quantum:
        if n % t == 0:
            return t
        t -= quantum
    return n


def _vmem_budget_bytes():
    """Generation-aware VMEM budget (~85% of physical, with a safe fallback)."""
    try:
        cap = int(pltpu.get_tpu_info().vmem_capacity_bytes)
    except Exception:
        cap = 64 * 1024 * 1024
    return max(32 * 1024 * 1024, int(cap * 0.85))


def _weight_spec(block_shape, index_map):
    """BlockSpec for grid-invariant weights: single-buffered when supported."""
    try:
        return pl.BlockSpec(block_shape, index_map,
                            pipeline_mode=pl.Buffered(1))
    except Exception:
        return pl.BlockSpec(block_shape, index_map)


def _default_tiles(B, L, Dff, budget):
    big = budget >= 80 * 1024 * 1024          # v5e/v6e (128 MiB) vs v7x (64 MiB)
    return dict(
        tq_proj=_pick_tile(L, 512 if big else 256, 16),   # LN+QKV seq tile
        tq_attn=_pick_tile(L, 256 if big else 128, 16),   # attention query tile
        tkv=_pick_tile(L, 512, 16),                       # attention KV chunk
        tm_ffn=_pick_tile(B * L, 1024 if big else 512, 16),  # FFN row tile (M=B*L)
        tf_ffn=_pick_tile(Dff, 2048, 128),                 # FFN hidden tile
    )


# ----------------------------------------------------------------------------
# Pallas kernels
# ----------------------------------------------------------------------------
def ln_qkv_kernel(x_ref, g_ref, b_ref, wqkv_ref, bqkv_ref, q_ref, k_ref, v_ref,
                  *, q_scale):
    """LayerNorm1 + fused QKV projection; lane-dense q/k/v, scale folded into q."""
    x = x_ref[0].astype(jnp.float32)                        # (TQ, D)
    xn = _layer_norm(x, g_ref[...], b_ref[...])
    qkv = jnp.dot(xn.astype(jnp.bfloat16), wqkv_ref[...],
                  preferred_element_type=jnp.float32) + bqkv_ref[...]
    d = q_ref.shape[-1]
    q_ref[0] = (qkv[:, :d] * q_scale).astype(q_ref.dtype)   # lane-dense stores
    k_ref[0] = qkv[:, d:2 * d].astype(k_ref.dtype)
    v_ref[0] = qkv[:, 2 * d:].astype(v_ref.dtype)


def attention_kernel(x_ref, q_ref, k_ref, v_ref, wo_ref, bo_ref, o_ref,
                     m_sc, l_sc, acc_sc, *, num_heads):
    """KV-chunked online-softmax attention + output projection + residual."""
    kv = pl.program_id(2)

    @pl.when(kv == 0)
    def _():
        m_sc[...] = jnp.full_like(m_sc, -jnp.inf)
        l_sc[...] = jnp.zeros_like(l_sc)
        acc_sc[...] = jnp.zeros_like(acc_sc)

    tq, d = q_ref.shape[1], q_ref.shape[2]
    tkv = k_ref.shape[1]
    dh = d // num_heads

    # lane-dense (T, D) tiles -> per-head views via a single reshape
    q = q_ref[0].reshape(tq, num_heads, dh)                 # bf16, pre-scaled
    k = k_ref[0].reshape(tkv, num_heads, dh)
    v = v_ref[0].reshape(tkv, num_heads, dh)

    # scores for this KV chunk: (H, TQ, TKV), f32 accumulation on the MXU
    s = jnp.einsum("qhd,khd->hqk", q, k, preferred_element_type=jnp.float32)

    m_prev = m_sc[...]                                      # (H, TQ)
    m_new = jnp.maximum(m_prev, jnp.max(s, axis=-1))
    alpha = jnp.exp(m_prev - m_new)                         # rescale factor
    p = jnp.exp(s - m_new[..., None])
    l_sc[...] = alpha * l_sc[...] + jnp.sum(p, axis=-1)
    ctx = jnp.einsum("hqk,khd->hqd", p.astype(jnp.bfloat16), v,
                     preferred_element_type=jnp.float32)
    acc_sc[...] = alpha[..., None] * acc_sc[...] + ctx
    m_sc[...] = m_new

    @pl.when(kv == pl.num_programs(2) - 1)
    def _():
        inv_l = pl.reciprocal(l_sc[...], approx=True)       # (H, TQ), EUP
        ctx_n = acc_sc[...] * inv_l[..., None]              # (H, TQ, dh)
        ctx2d = jnp.swapaxes(ctx_n, 0, 1).reshape(tq, d)    # lane-dense (TQ, D)
        out = jnp.dot(ctx2d.astype(jnp.bfloat16), wo_ref[...],
                      preferred_element_type=jnp.float32) + bo_ref[...]
        o_ref[0] = (x_ref[0].astype(jnp.float32) + out).astype(o_ref.dtype)


def ln_ffn_kernel(x_ref, g_ref, b_ref, w1_ref, b1_ref, w2_ref, b2_ref, o_ref,
                  xn_ref, acc_ref):
    """LayerNorm2 + FFN over flattened rows; Dff tiled as reduction axis 1."""
    f = pl.program_id(1)

    @pl.when(f == 0)
    def _():
        xn_ref[...] = _layer_norm(
            x_ref[...].astype(jnp.float32), g_ref[...], b_ref[...]
        ).astype(xn_ref.dtype)
        acc_ref[...] = jnp.zeros_like(acc_ref)

    h = jnp.dot(xn_ref[...], w1_ref[...],
                preferred_element_type=jnp.float32) + b1_ref[...]
    h = jax.nn.gelu(h, approximate=True)
    acc_ref[...] += jnp.dot(h.astype(jnp.bfloat16), w2_ref[...],
                            preferred_element_type=jnp.float32)

    @pl.when(f == pl.num_programs(1) - 1)
    def _():
        o_ref[...] = (x_ref[...].astype(jnp.float32) + acc_ref[...] +
                      b2_ref[...]).astype(o_ref.dtype)


def final_ln_pool_kernel(x_ref, g_ref, b_ref, cls_ref, avg_ref):
    """emb_layer_norm_after + the cls / mean pooling reductions, fused."""
    x = x_ref[0].astype(jnp.float32)                        # (L, D)
    xn = _layer_norm(x, g_ref[...], b_ref[...])
    cls_ref[...] = xn[0:1, :].astype(cls_ref.dtype)         # out[:, 0]
    avg_ref[...] = jnp.mean(xn, axis=0, keepdims=True).astype(avg_ref.dtype)


# ----------------------------------------------------------------------------
# pallas_call wrappers
# ----------------------------------------------------------------------------
def run_ln_qkv(x, p, *, num_heads, tq, vmem_limit):
    B, L, D = x.shape
    nq = L // tq
    kernel = functools.partial(ln_qkv_kernel,
                               q_scale=1.0 / math.sqrt(D // num_heads))
    out_spec = pl.BlockSpec((1, tq, D), lambda b, qi: (b, qi, 0))
    return pl.pallas_call(
        kernel,
        grid=(B, nq),
        in_specs=[
            pl.BlockSpec((1, tq, D), lambda b, qi: (b, qi, 0)),
            _weight_spec((1, D), lambda b, qi: (0, 0)),
            _weight_spec((1, D), lambda b, qi: (0, 0)),
            _weight_spec((D, 3 * D), lambda b, qi: (0, 0)),
            _weight_spec((1, 3 * D), lambda b, qi: (0, 0)),
        ],
        out_specs=(out_spec, out_spec, out_spec),
        out_shape=tuple(jax.ShapeDtypeStruct((B, L, D), jnp.bfloat16)
                        for _ in range(3)),
        compiler_params=pltpu.CompilerParams(
            dimension_semantics=("parallel", "parallel"),
            vmem_limit_bytes=vmem_limit),
    )(x, p["ln1_g"], p["ln1_b"], p["wqkv"], p["bqkv"])


def run_attention(x, q, k, v, p, *, num_heads, tq, tkv, vmem_limit):
    B, L, D = x.shape
    dh = D // num_heads
    nq, nkv = L // tq, L // tkv
    kernel = functools.partial(attention_kernel, num_heads=num_heads)
    return pl.pallas_call(
        kernel,
        grid=(B, nq, nkv),
        in_specs=[
            pl.BlockSpec((1, tq, D), lambda b, qi, ki: (b, qi, 0)),   # residual x
            pl.BlockSpec((1, tq, D), lambda b, qi, ki: (b, qi, 0)),   # q tile
            pl.BlockSpec((1, tkv, D), lambda b, qi, ki: (b, ki, 0)),  # k chunk
            pl.BlockSpec((1, tkv, D), lambda b, qi, ki: (b, ki, 0)),  # v chunk
            _weight_spec((D, D), lambda b, qi, ki: (0, 0)),           # wo
            _weight_spec((1, D), lambda b, qi, ki: (0, 0)),           # bo
        ],
        out_specs=pl.BlockSpec((1, tq, D), lambda b, qi, ki: (b, qi, 0)),
        out_shape=jax.ShapeDtypeStruct((B, L, D), jnp.bfloat16),
        scratch_shapes=[
            pltpu.VMEM((num_heads, tq), jnp.float32),        # running max m
            pltpu.VMEM((num_heads, tq), jnp.float32),        # running denom l
            pltpu.VMEM((num_heads, tq, dh), jnp.float32),    # running context
        ],
        compiler_params=pltpu.CompilerParams(
            dimension_semantics=("parallel", "parallel", "arbitrary"),
            vmem_limit_bytes=vmem_limit),
    )(x, q, k, v, p["wo"], p["bo"])


def run_ffn(x, p, *, tm, tf, vmem_limit):
    B, L, D = x.shape
    M = B * L
    Dff = p["w1"].shape[1]
    nm, nf = M // tm, Dff // tf
    x2 = x.reshape(M, D)                                    # free reshape
    out = pl.pallas_call(
        ln_ffn_kernel,
        grid=(nm, nf),
        in_specs=[
            pl.BlockSpec((tm, D), lambda m, f: (m, 0)),
            _weight_spec((1, D), lambda m, f: (0, 0)),
            _weight_spec((1, D), lambda m, f: (0, 0)),
            pl.BlockSpec((D, tf), lambda m, f: (0, f)),
            pl.BlockSpec((1, tf), lambda m, f: (0, f)),
            pl.BlockSpec((tf, D), lambda m, f: (f, 0)),
            _weight_spec((1, D), lambda m, f: (0, 0)),
        ],
        out_specs=pl.BlockSpec((tm, D), lambda m, f: (m, 0)),
        out_shape=jax.ShapeDtypeStruct((M, D), jnp.bfloat16),
        scratch_shapes=[pltpu.VMEM((tm, D), jnp.bfloat16),   # LN2(x) cache
                        pltpu.VMEM((tm, D), jnp.float32)],   # f32 accumulator
        compiler_params=pltpu.CompilerParams(
            dimension_semantics=("parallel", "arbitrary"),
            vmem_limit_bytes=vmem_limit),
    )(x2, p["ln2_g"], p["ln2_b"], p["w1"], p["b1"], p["w2"], p["b2"])
    return out.reshape(B, L, D)


def run_final_ln_pool(x, gamma, beta, *, vmem_limit):
    B, L, D = x.shape
    return pl.pallas_call(
        final_ln_pool_kernel,
        grid=(B,),
        in_specs=[
            pl.BlockSpec((1, L, D), lambda b: (b, 0, 0)),
            _weight_spec((1, D), lambda b: (0, 0)),
            _weight_spec((1, D), lambda b: (0, 0)),
        ],
        out_specs=(
            pl.BlockSpec((1, D), lambda b: (b, 0)),
            pl.BlockSpec((1, D), lambda b: (b, 0)),
        ),
        out_shape=(
            jax.ShapeDtypeStruct((B, D), jnp.float32),
            jax.ShapeDtypeStruct((B, D), jnp.float32),
        ),
        compiler_params=pltpu.CompilerParams(
            dimension_semantics=("parallel",),
            vmem_limit_bytes=vmem_limit),
    )(x, gamma, beta)


# ----------------------------------------------------------------------------
# parameters & forward pass
# ----------------------------------------------------------------------------
def init_params(key, vocab, num_layers, D, H, Dff):
    keys = jax.random.split(key, 1 + num_layers)
    params = {
        "embed": (jax.random.normal(keys[0], (vocab, D), jnp.float32) * 0.02
                  ).astype(jnp.bfloat16)
    }
    layers = []
    for li in range(num_layers):
        ks = jax.random.split(keys[1 + li], 6)
        wq = jax.random.normal(ks[0], (D, D), jnp.float32) * 0.05
        wk = jax.random.normal(ks[1], (D, D), jnp.float32) * 0.05
        wv = jax.random.normal(ks[2], (D, D), jnp.float32) * 0.05
        layers.append({
            "ln1_g": jnp.ones((1, D), jnp.float32),
            "ln1_b": jnp.zeros((1, D), jnp.float32),
            # fused QKV projection weights (bf16), biases in f32
            "wqkv": jnp.concatenate([wq, wk, wv], axis=1).astype(jnp.bfloat16),
            "bqkv": jnp.zeros((1, 3 * D), jnp.float32),
            "wo": (jax.random.normal(ks[3], (D, D), jnp.float32) * 0.05
                   ).astype(jnp.bfloat16),
            "bo": jnp.zeros((1, D), jnp.float32),
            "ln2_g": jnp.ones((1, D), jnp.float32),
            "ln2_b": jnp.zeros((1, D), jnp.float32),
            "w1": (jax.random.normal(ks[4], (D, Dff), jnp.float32) * 0.05
                   ).astype(jnp.bfloat16),
            "b1": jnp.zeros((1, Dff), jnp.float32),
            "w2": (jax.random.normal(ks[5], (Dff, D), jnp.float32) * 0.05
                   ).astype(jnp.bfloat16),
            "b2": jnp.zeros((1, D), jnp.float32),
        })
    params["layers"] = layers
    params["ln_f_g"] = jnp.ones((1, D), jnp.float32)
    params["ln_f_b"] = jnp.zeros((1, D), jnp.float32)
    return params


def pepcl_forward(input_ids, params, *, num_heads, pooling, tiles=None):
    """PepCLModel.forward: ESM2 representations -> dropout(identity) -> pooling."""
    # Embedding gather is glue, done in plain JAX; activations are bf16.
    x = jnp.take(params["embed"], input_ids, axis=0)          # (B, L, D) bf16
    B, L, D = x.shape
    Dff = params["layers"][0]["w1"].shape[1]
    vmem_limit = _vmem_budget_bytes()
    t = _default_tiles(B, L, Dff, vmem_limit)
    if tiles:
        t.update(tiles)
    for p in params["layers"]:
        q, k, v = run_ln_qkv(x, p, num_heads=num_heads, tq=t["tq_proj"],
                             vmem_limit=vmem_limit)
        x = run_attention(x, q, k, v, p, num_heads=num_heads,
                          tq=t["tq_attn"], tkv=t["tkv"], vmem_limit=vmem_limit)
        x = run_ffn(x, p, tm=t["tm_ffn"], tf=t["tf_ffn"], vmem_limit=vmem_limit)
    cls_out, avg_out = run_final_ln_pool(x, params["ln_f_g"], params["ln_f_b"],
                                         vmem_limit=vmem_limit)
    if pooling == "cls":
        return cls_out
    if pooling in ("last-avg", "first-last-avg"):
        return avg_out
    raise NotImplementedError(f"pooling mode '{pooling}' not supported")


# ----------------------------------------------------------------------------
# Pure-JAX reference (cross-check of the Pallas kernels)
# ----------------------------------------------------------------------------
def _ref_forward(input_ids, params, num_heads, pooling, eps=1e-5):
    x = jnp.take(params["embed"], input_ids, axis=0).astype(jnp.float32)
    B, L, D = x.shape
    dh = D // num_heads
    scale = 1.0 / math.sqrt(dh)
    for p in params["layers"]:
        xn = _layer_norm(x, p["ln1_g"], p["ln1_b"], eps)
        qkv = xn @ p["wqkv"].astype(jnp.float32) + p["bqkv"]
        # kernel stores q (pre-scaled) / k / v in bf16
        q = (qkv[..., :D] * scale).astype(jnp.bfloat16).astype(jnp.float32)
        k = qkv[..., D:2 * D].astype(jnp.bfloat16).astype(jnp.float32)
        v = qkv[..., 2 * D:].astype(jnp.bfloat16).astype(jnp.float32)
        q = q.reshape(B, L, num_heads, dh)
        k = k.reshape(B, L, num_heads, dh)
        v = v.reshape(B, L, num_heads, dh)
        s = jnp.einsum("bqhd,bkhd->bhqk", q, k)   # scale already folded into q
        a = jax.nn.softmax(s, axis=-1)
        ctx = jnp.einsum("bhqk,bkhd->bqhd", a, v).reshape(B, L, D)
        x = x + ctx @ p["wo"].astype(jnp.float32) + p["bo"]
        x = x.astype(jnp.bfloat16).astype(jnp.float32)    # bf16 inter-kernel act
        xn = _layer_norm(x, p["ln2_g"], p["ln2_b"], eps)
        h = jax.nn.gelu(xn @ p["w1"].astype(jnp.float32) + p["b1"],
                        approximate=True)
        x = x + h @ p["w2"].astype(jnp.float32) + p["b2"]
        x = x.astype(jnp.bfloat16).astype(jnp.float32)    # bf16 inter-layer act
    x = _layer_norm(x, params["ln_f_g"], params["ln_f_b"], eps)
    if pooling == "cls":
        return x[:, 0]
    return jnp.mean(x, axis=1)


if __name__ == "__main__":
    B, L, D, H, DFF = 2, 16, 32, 4, 64
    VOCAB, NUM_LAYERS = 33, 2
    POOLING = "last-avg"

    key = jax.random.PRNGKey(0)
    k_ids, k_par = jax.random.split(key)
    input_ids = jax.random.randint(k_ids, (B, L), 0, VOCAB, dtype=jnp.int32)
    params = init_params(k_par, VOCAB, NUM_LAYERS, D, H, DFF)

    # small-shape tile overrides that still exercise the multi-tile paths:
    # nq=2 per kernel, nkv=2 (online softmax across KV chunks), nm=2 FFN tiles.
    tiles = dict(tq_proj=8, tq_attn=8, tkv=8, tm_ffn=16, tf_ffn=DFF)

    out = pepcl_forward(input_ids, params, num_heads=H, pooling=POOLING,
                        tiles=tiles)
    out = jax.block_until_ready(out)
    assert out.shape == (B, D), out.shape

    ref = _ref_forward(input_ids, params, H, POOLING)
    np.testing.assert_allclose(np.asarray(out, dtype=np.float32),
                               np.asarray(ref, dtype=np.float32),
                               rtol=3e-2, atol=3e-2)

    print("KERNEL_OK")
</pallas_src>

<mosaic_0001>
module attributes {stable_mosaic.version = 11 : i64} {
  func.func @ln_qkv_kernel(%arg0: i32, %arg1: i32, %arg2: memref<1x8x32xbf16, #tpu.memory_space<vmem>>, %arg3: memref<1x32xf32, #tpu.memory_space<vmem>>, %arg4: memref<1x32xf32, #tpu.memory_space<vmem>>, %arg5: memref<32x96xbf16, #tpu.memory_space<vmem>>, %arg6: memref<1x96xf32, #tpu.memory_space<vmem>>, %arg7: memref<1x8x32xbf16, #tpu.memory_space<vmem>>, %arg8: memref<1x8x32xbf16, #tpu.memory_space<vmem>>, %arg9: memref<1x8x32xbf16, #tpu.memory_space<vmem>>) attributes {dimension_semantics = [#tpu.dimension_semantics<parallel>, #tpu.dimension_semantics<parallel>], iteration_bounds = array<i64: 2, 2>, scalar_prefetch = 0 : i64, scratch_operands = 0 : i64, tpu.core_type = #tpu.core_type<tc>, window_params = [{transform_indices = @transform_0, window_bounds = array<i64: 1, 8, 32>}, {pipeline_mode = #tpu.pipeline_mode<synchronous>, transform_indices = @transform_1, window_bounds = array<i64: 1, 32>}, {pipeline_mode = #tpu.pipeline_mode<synchronous>, transform_indices = @transform_2, window_bounds = array<i64: 1, 32>}, {pipeline_mode = #tpu.pipeline_mode<synchronous>, transform_indices = @transform_3, window_bounds = array<i64: 32, 96>}, {pipeline_mode = #tpu.pipeline_mode<synchronous>, transform_indices = @transform_4, window_bounds = array<i64: 1, 96>}, {transform_indices = @transform_5, window_bounds = array<i64: 1, 8, 32>}, {transform_indices = @transform_6, window_bounds = array<i64: 1, 8, 32>}, {transform_indices = @transform_7, window_bounds = array<i64: 1, 8, 32>}]} {
    %c0 = arith.constant 0 : index
    %c0_0 = arith.constant 0 : index
    %c0_1 = arith.constant 0 : index
    %0 = vector.load %arg2[%c0, %c0_0, %c0_1] : memref<1x8x32xbf16, #tpu.memory_space<vmem>>, vector<1x8x32xbf16>
    %1 = vector.shape_cast %0 : vector<1x8x32xbf16> to vector<8x32xbf16>
    %2 = arith.extf %1 : vector<8x32xbf16> to vector<8x32xf32>
    %c0_2 = arith.constant 0 : index
    %c0_3 = arith.constant 0 : index
    %3 = vector.load %arg3[%c0_2, %c0_3] : memref<1x32xf32, #tpu.memory_space<vmem>>, vector<1x32xf32>
    %c0_4 = arith.constant 0 : index
    %c0_5 = arith.constant 0 : index
    %4 = vector.load %arg4[%c0_4, %c0_5] : memref<1x32xf32, #tpu.memory_space<vmem>>, vector<1x32xf32>
    %cst = arith.constant dense<0.000000e+00> : vector<8xf32>
    %5 = vector.multi_reduction <add>, %2, %cst [1] : vector<8x32xf32> to vector<8xf32>
    %6 = vector.shape_cast %5 : vector<8xf32> to vector<8x1xf32>
    %cst_6 = arith.constant 3.200000e+01 : f32
    %7 = vector.broadcast %cst_6 : f32 to vector<8x1xf32>
    %8 = arith.divf %6, %7 : vector<8x1xf32>
    %9 = vector.broadcast %8 : vector<8x1xf32> to vector<8x32xf32>
    %10 = arith.subf %2, %9 : vector<8x32xf32>
    %11 = arith.mulf %10, %10 : vector<8x32xf32>
    %cst_7 = arith.constant dense<0.000000e+00> : vector<8xf32>
    %12 = vector.multi_reduction <add>, %11, %cst_7 [1] : vector<8x32xf32> to vector<8xf32>
    %13 = vector.shape_cast %12 : vector<8xf32> to vector<8x1xf32>
    %cst_8 = arith.constant 3.200000e+01 : f32
    %14 = vector.broadcast %cst_8 : f32 to vector<8x1xf32>
    %15 = arith.divf %13, %14 : vector<8x1xf32>
    %16 = vector.broadcast %8 : vector<8x1xf32> to vector<8x32xf32>
    %17 = arith.subf %2, %16 : vector<8x32xf32>
    %cst_9 = arith.constant 9.99999974E-6 : f32
    %18 = vector.broadcast %cst_9 : f32 to vector<8x1xf32>
    %19 = arith.addf %15, %18 : vector<8x1xf32>
    %20 = math.rsqrt %19 : vector<8x1xf32>
    %21 = vector.broadcast %20 : vector<8x1xf32> to vector<8x32xf32>
    %22 = arith.mulf %17, %21 : vector<8x32xf32>
    %23 = vector.broadcast %3 : vector<1x32xf32> to vector<8x32xf32>
    %24 = arith.mulf %22, %23 : vector<8x32xf32>
    %25 = vector.broadcast %4 : vector<1x32xf32> to vector<8x32xf32>
    %26 = arith.addf %24, %25 : vector<8x32xf32>
    %27 = arith.truncf %26 : vector<8x32xf32> to vector<8x32xbf16>
    %c0_10 = arith.constant 0 : index
    %c0_11 = arith.constant 0 : index
    %28 = vector.load %arg5[%c0_10, %c0_11] : memref<32x96xbf16, #tpu.memory_space<vmem>>, vector<32x96xbf16>
    %cst_12 = arith.constant dense<0.000000e+00> : vector<8x96xf32>
    %29 = tpu.matmul %27, %28, %cst_12 {dimension_numbers = #tpu.dot_dimension_numbers<[1], [0], [0], [1], [0, 0, 1, 1], [], []>} : vector<8x32xbf16>, vector<32x96xbf16>, vector<8x96xf32> -> vector<8x96xf32>
    %c0_13 = arith.constant 0 : index
    %c0_14 = arith.constant 0 : index
    %30 = vector.load %arg6[%c0_13, %c0_14] : memref<1x96xf32, #tpu.memory_space<vmem>>, vector<1x96xf32>
    %31 = vector.broadcast %30 : vector<1x96xf32> to vector<8x96xf32>
    %32 = arith.addf %29, %31 : vector<8x96xf32>
    %33 = vector.extract_strided_slice %32 {offsets = [0, 0], sizes = [8, 32], strides = [1, 1]} : vector<8x96xf32> to vector<8x32xf32>
    %cst_15 = arith.constant 0.353553385 : f32
    %34 = vector.broadcast %cst_15 : f32 to vector<8x32xf32>
    %35 = arith.mulf %33, %34 : vector<8x32xf32>
    %36 = arith.truncf %35 : vector<8x32xf32> to vector<8x32xbf16>
    %c0_16 = arith.constant 0 : index
    %c0_17 = arith.constant 0 : index
    %c0_18 = arith.constant 0 : index
    %37 = vector.load %arg7[%c0_16, %c0_17, %c0_18] : memref<1x8x32xbf16, #tpu.memory_space<vmem>>, vector<1x8x32xbf16>
    %38 = vector.shape_cast %37 : vector<1x8x32xbf16> to vector<8x32xbf16>
    %39 = vector.shape_cast %36 : vector<8x32xbf16> to vector<1x8x32xbf16>
    tpu.vector_store %arg7[%c0_16, %c0_17, %c0_18], %39 {strides = array<i32>} : memref<1x8x32xbf16, #tpu.memory_space<vmem>>, vector<1x8x32xbf16>,
    %40 = vector.extract_strided_slice %32 {offsets = [0, 32], sizes = [8, 32], strides = [1, 1]} : vector<8x96xf32> to vector<8x32xf32>
    %41 = arith.truncf %40 : vector<8x32xf32> to vector<8x32xbf16>
    %c0_19 = arith.constant 0 : index
    %c0_20 = arith.constant 0 : index
    %c0_21 = arith.constant 0 : index
    %42 = vector.load %arg8[%c0_19, %c0_20, %c0_21] : memref<1x8x32xbf16, #tpu.memory_space<vmem>>, vector<1x8x32xbf16>
    %43 = vector.shape_cast %42 : vector<1x8x32xbf16> to vector<8x32xbf16>
    %44 = vector.shape_cast %41 : vector<8x32xbf16> to vector<1x8x32xbf16>
    tpu.vector_store %arg8[%c0_19, %c0_20, %c0_21], %44 {strides = array<i32>} : memref<1x8x32xbf16, #tpu.memory_space<vmem>>, vector<1x8x32xbf16>,
    %45 = vector.extract_strided_slice %32 {offsets = [0, 64], sizes = [8, 32], strides = [1, 1]} : vector<8x96xf32> to vector<8x32xf32>
    %46 = arith.truncf %45 : vector<8x32xf32> to vector<8x32xbf16>
    %c0_22 = arith.constant 0 : index
    %c0_23 = arith.constant 0 : index
    %c0_24 = arith.constant 0 : index
    %47 = vector.load %arg9[%c0_22, %c0_23, %c0_24] : memref<1x8x32xbf16, #tpu.memory_space<vmem>>, vector<1x8x32xbf16>
    %48 = vector.shape_cast %47 : vector<1x8x32xbf16> to vector<8x32xbf16>
    %49 = vector.shape_cast %46 : vector<8x32xbf16> to vector<1x8x32xbf16>
    tpu.vector_store %arg9[%c0_22, %c0_23, %c0_24], %49 {strides = array<i32>} : memref<1x8x32xbf16, #tpu.memory_space<vmem>>, vector<1x8x32xbf16>,
    return
  }
  func.func @transform_0(%arg0: i32, %arg1: i32) -> (i32, i32, i32) {
    %c0_i32 = arith.constant 0 : i32
    %c0_i32_0 = arith.constant 0 : i32
    return %arg0, %arg1, %c0_i32 : i32, i32, i32
  }
  func.func @transform_1(%arg0: i32, %arg1: i32) -> (i32, i32) {
    %c0_i32 = arith.constant 0 : i32
    %c0_i32_0 = arith.constant 0 : i32
    %c0_i32_1 = arith.constant 0 : i32
    return %c0_i32, %c0_i32_0 : i32, i32
  }
  func.func @transform_2(%arg0: i32, %arg1: i32) -> (i32, i32) {
    %c0_i32 = arith.constant 0 : i32
    %c0_i32_0 = arith.constant 0 : i32
    %c0_i32_1 = arith.constant 0 : i32
    return %c0_i32, %c0_i32_0 : i32, i32
  }
  func.func @transform_3(%arg0: i32, %arg1: i32) -> (i32, i32) {
    %c0_i32 = arith.constant 0 : i32
    %c0_i32_0 = arith.constant 0 : i32
    %c0_i32_1 = arith.constant 0 : i32
    return %c0_i32, %c0_i32_0 : i32, i32
  }
  func.func @transform_4(%arg0: i32, %arg1: i32) -> (i32, i32) {
    %c0_i32 = arith.constant 0 : i32
    %c0_i32_0 = arith.constant 0 : i32
    %c0_i32_1 = arith.constant 0 : i32
    return %c0_i32, %c0_i32_0 : i32, i32
  }
  func.func @transform_5(%arg0: i32, %arg1: i32) -> (i32, i32, i32) {
    %c0_i32 = arith.constant 0 : i32
    %c0_i32_0 = arith.constant 0 : i32
    return %arg0, %arg1, %c0_i32 : i32, i32, i32
  }
  func.func @transform_6(%arg0: i32, %arg1: i32) -> (i32, i32, i32) {
    %c0_i32 = arith.constant 0 : i32
    %c0_i32_0 = arith.constant 0 : i32
    return %arg0, %arg1, %c0_i32 : i32, i32, i32
  }
  func.func @transform_7(%arg0: i32, %arg1: i32) -> (i32, i32, i32) {
    %c0_i32 = arith.constant 0 : i32
    %c0_i32_0 = arith.constant 0 : i32
    return %arg0, %arg1, %c0_i32 : i32, i32, i32
  }
}

</mosaic_0001>

<bundles_post_ra>
// kernel: tpu_custom_call.1
= control target key start
LH: loop header
LB: loop body
LE: loop exit
PB: predicated region body
PF: predicated region fallthrough
CT: control target
= control target key end

     0   :  { %s1364_s0 = inlined_call_operand.hbm [shape: bf16[2,16,32], index: 0, kind: input, shape index: {}]   ;;  %s1365_s1 = inlined_call_operand.vmem [shape: f32[1,32], index: 1, kind: input, shape index: {}]   ;;  %s1366_s2 = inlined_call_operand.vmem [shape: f32[1,32], index: 2, kind: input, shape index: {}]   ;;  %s1367_s3 = inlined_call_operand.hbm [shape: bf16[32,96], index: 3, kind: input, shape index: {}]   ;;  %s1368_s4 = inlined_call_operand.vmem [shape: f32[1,96], index: 4, kind: input, shape index: {}]   ;;  %s1369_s5 = inlined_call_operand.hbm [shape: bf16[2,16,32], index: 5, kind: output, shape index: {0}]   ;;  %s1370_s6 = inlined_call_operand.hbm [shape: bf16[2,16,32], index: 6, kind: output, shape index: {1}]   ;;  %s1371_s7 = inlined_call_operand.hbm [shape: bf16[2,16,32], index: 7, kind: output, shape index: {2}]  }
   0x1   :  { %1382 = sst [smem:[#allocation19_spill]] %s1367_s3 }
   0x2   :  { %1383 = sst [smem:[#allocation20_spill]] %s1368_s4 }
   0x3   :  { %1384 = sst [smem:[#allocation21_spill]] %s1369_s5 }
   0x4   :  { %1385 = sst [smem:[#allocation22_spill]] %s1370_s6 }
   0x5   :  { %1386 = sst [smem:[#allocation23_spill]] %s1371_s7 }
   0x6   :  { %13 = vsyncpa [#allocation3], 0 }
   0x7   :  { %15 = vsyncpa [#allocation3 + $0x1], 0 }
   0x8   :  { %16 = vsyncpa [#allocation6], 0 }
   0x9   :  { %17 = vsyncpa [#allocation4], 0 }
   0xa   :  { %19 = vsyncpa [#allocation4 + $0x1], 0 }
   0xb   :  { %20 = vsyncpa [#allocation9], 0 }
   0xc   :  { %22 = vsyncpa [#allocation9 + $0x1], 0  ;;  %s1098_s24 = smov 0   ;;  %s1100_s25 = smov 0  }
   0xd   :  { %s1102_s26 = smov 0   ;;  %s1104_s27 = smov 0  }
   0xe   :  { %s1106_s28 = smov 0   ;;  %s1108_s29 = smov 0  }
   0xf   :  { %s1110_s30 = smov 0   ;;  %s1112_s8 = smov 0  }
  0x10 LB: > { %1387 = sst [smem:[#allocation15_spill]] %s1017_s24  ;;  %s1139_s9 = sadd.s32 4294967295, %s1045_s8   ;;  %s1045_s8 = sphi %s1112_s8, %s28_s8   ;;  %s1041_s30 = sphi %s1110_s30, %s1419_s30   ;;  %s1037_s29 = sphi %s1108_s29, %s1418_s29   ;;  %s1033_s28 = sphi %s1106_s28, %s1417_s28   ;;  %s1029_s27 = sphi %s1104_s27, %s1416_s27   ;;  %s1025_s26 = sphi %s1102_s26, %s1415_s26   ;;  %s1021_s25 = sphi %s1100_s25, %s1414_s25   ;;  %s1017_s24 = sphi %s1098_s24, %s1413_s24  }
  0x11   : > { %s1372_s10 = sadd.s32 4294967294, %s1045_s8   ;;  %p62_p0 = scmp.ne.s32.totalorder %s1021_s25, %s1017_s24 }
  0x12   : > { %p1381_p1 = scmp.eq.s32.totalorder %s1139_s9, 0  ;;  %p178_p3 = scmp.eq.s32.totalorder %s1372_s10, 3 }
  0x13   : > { %p684_p5 = scmp.ge.s32.totalorder %s1045_s8, 1  ;;  %p241_p7 = scmp.lt.s32.totalorder %s1045_s8, 5 }
  0x14   : > { %p1150_p4 = por %p1381_p1, %p62_p0  ;;  %p1155_p6 = por %p178_p3, %p62_p0 }
  0x15   : > { %p1160_p8 = pnand %p684_p5, %p241_p7  ;;  %s1047_s14 = smov [#allocation5]  }
  0x16   : > { %s1389_s12 = scalar_select %p1155_p6, 1, 0 }
  0x17   : > { %s259_s15 = sshll.u32 %s1047_s14, 4  ;;  %p738_p9 = pneg %p1160_p8  ;;  %s260_s15 = int_to_ptr.vmem [resolvable:$true] %s259_s15 }
  0x18   : > { %1390 = sst [smem:[#allocation16_spill]] %s1389_s12  ;;  %s846_s16 = scalar_lea.vmem %s260_s15, 256 }
  0x19   : > { %p739_p10 = pnand %p738_p9, %p1381_p1  ;;  %p847_p12 = scmp.ne.s32.totalorder %s260_s15, %s846_s16 }
  0x1a   : > { %p854_p3 = scmp.lt.s32.totalorder %s260_s15, %s260_s15  ;;  %p855_p2 = scmp.lt.s32.totalorder %s846_s16, %s846_s16 }
  0x1b   : > { %p837_p11 = pneg %p739_p10 }
  0x1c   : > { %p856_p6 = por %p855_p2, %p854_p3 }
  0x1d   : > { %p849_p13 = pnand %p847_p12, %p837_p11 }
  0x1f   : > { %p850_p0 = pneg %p849_p13 }
  0x21   : > { %p857_p5 = pnand %p856_p6, %p850_p0 }
  0x23   : > { %860 = shalt.err (!%p857_p5)
}
  0x24   : > { %s1048_s17 = smov 64   ;;  %s1049_s18 = smov 4  }
  0x25   : > { %s1392_s3 = sld [smem:[#allocation19_spill]]  ;;  %s37_s21 = sadd.s32 1, %s1037_s29 }
  0x26   : > { %p38_p2 = scmp.ge.s32.totalorder %s37_s21, 2  ;;  %s40_s22 = sadd.s32 1, %s1041_s30 }
  0x27   : > { %s49_s23 = sadd.s32 1, %s1025_s26  ;;  %p56_p6 = scmp.ne.s32.totalorder %s1025_s26, %s1021_s25 }
  0x28   : > { %s1421_s21 = smov (%p38_p2, %s37_s21), 0  ;;  %s1423_s22 = smov (!%p38_p2, %s40_s22), %s1041_s30 }
  0x29   : > { %1393 = sst [smem:[#allocation17_spill]] %s1421_s21  ;;  %s45_s14 = ssub.s32 %s1037_s29, %s1421_s21 }
  0x2a   : > { %p57_p7 = scmp.eq.s32.totalorder %s1045_s8, 0  ;;  %p42_p9 = scmp.ge.s32.totalorder %s1423_s22, 2 }
  0x2b   : > { %741 = dma.hbm_to_vmem [thread:$0]  (!%p739_p10), %s1392_s3, 256, %s260_s15, [#allocation6], %s1048_s17, %s1048_s17, %s1049_s18  }
  0x2c   : > { %p1394_p11 = scmp.eq.s32.totalorder %s1139_s9, 3  ;;  %p1188_p10 = por %p57_p7, %p56_p6 }
  0x2d   : > { %p757_p13 = scmp.lt.s32.totalorder %s1045_s8, 4  ;;  %s1425_s22 = smov (%p42_p9, %s1423_s22), 0 }
  0x2e   : > { %p1184_p12 = por %p1394_p11, %p56_p6  ;;  %s276_s17 = sand.u32 1, %s1025_s26  }
  0x2f   : > { %s688_s18 = sshll.u32 %s1041_s30, 1  ;;  %s44_s19 = ssub.s32 %s1041_s30, %s1425_s22 }
  0x30   : > { %s1395_s16 = scalar_select %p1184_p12, 1, 0 }
  0x31   : > { %s46_s20 = sor.u32 %s45_s14, %s44_s19  ;;  %s687_s10 = sshll.u32 %s276_s17, 2 }
  0x32   : > { %1396 = sst [smem:[#allocation18_spill]] %s1395_s16  ;;  %p47_p0 = scmp.eq.s32.totalorder %s46_s20, 0 }
  0x33   : > { %s285_s3 = sadd.s32 %s1037_s29, %s688_s18  ;;  %s280_s21 = scalar_lea.vmem [#allocation2], %s687_s10 }
  0x34   : > { %s289_s12 = sshll.u32 %s280_s21, 4  ;;  %s689_s7 = sshll.u32 %s285_s3, 6  ;;  %s290_s12 = int_to_ptr.vmem [resolvable:$true] %s289_s12 }
  0x35   : > { %s1201_s24 = scalar_select %p47_p0, %s1025_s26, %s49_s23  }
  0x36   : > { %s287_s16 = scalar_lea.hbm %s1364_s0, %s689_s7  ;;  %p1210_p3 = pnand %p757_p13, %p1188_p10 }
  0x37   : > { %s277_s14 = scalar_lea.sflag [#allocation3], %s276_s17  ;;  %s874_s10 = scalar_lea.vmem %s290_s12, 64 }
  0x38   : > { %p863_p5 = pneg %p1210_p3  ;;  %p875_p2 = scmp.ne.s32.totalorder %s290_s12, %s874_s10 }
  0x39   : > { %s1050_s3 = smov [#allocation2]  }
  0x3a   : > { %p877_p6 = pnand %p875_p2, %p863_p5  ;;  %s879_s21 = sshll.u32 %s1050_s3, 4  ;;  %s880_s21 = int_to_ptr.vmem [resolvable:$false] %s879_s21 }
  0x3b   : > { %s881_s23 = scalar_lea.vmem %s880_s21, 128  ;;  %p882_p9 = scmp.lt.s32.totalorder %s290_s12, %s880_s21 }
  0x3c   : > { %p878_p7 = pneg %p877_p6  ;;  %p883_p11 = scmp.lt.s32.totalorder %s881_s23, %s874_s10 }
  0x3e   : > { %p884_p0 = por %p883_p11, %p882_p9 }
  0x40   : > { %p885_p1 = pnand %p884_p0, %p878_p7 }
  0x42   : > { %888 = shalt.err (!%p885_p1)
}
  0x43   : > { %745 = dma.hbm_to_vmem [thread:$0]  (!%p1210_p3), %s287_s16, 64, %s290_s12, %s277_s14  }
  0x44   : > { %298 = sbr.rel (%p1160_p8) target bundleno = 737 (0x2e1), region = 40  ;;  %s1221_s5 = sand.u32 (!%p1160_p8), 1, %s1021_s25  }
  0x45   : > { %s1224_s6 = sshll.u32 (!%p1160_p8), %s1221_s5, 2  ;;  %s301_s7 = scalar_lea.sflag (!%p1160_p8), [#allocation3], %s1221_s5 }
  0x46   : > { %s304_s15 = scalar_lea.vmem (!%p1160_p8), [#allocation2], %s1224_s6 }
  0x49   : > { %1000 = dma.done.wait (%p1150_p4), %s301_s7, 64  }
  0x4a   : > { %1002 = vsyncadd (%p1150_p4), %s301_s7, 4294967232  ;;  %p1399_p1 = scmp.eq.s32.totalorder %s1139_s9, 0 }
  0x4c   : > { %1004 = dma.done.wait (%p1399_p1), [#allocation6], 256   ;;  %p1400_p8 = pmov %p1399_p1 }
  0x4d   : > { %vm354_vm0 = vcmask 261120   ;;  %v350_v0 = vld [vmem:[%s304_s15] sm:$0xf]  ;;  %v831_v8 = vld [vmem:[#allocation5 + $0x8] sm:$0xff]   ;;  %v1051_v9 = vmov 0.0   ;;  %vm1052_vm1 = vmmov 0  }
  0x4e   : > { %1006 = vsyncadd (%p1400_p8), [#allocation6], 4294967040  ;;  %v351_v1 = vunpack.c.l.bf16 %v350_v0  ;;  %718 = vmatprep.subr.bf16.mxu0 %v1051_v9  ;;  %722 = vmatprep.mubr.msk.bf16.mxu0 %vm1052_vm1, %v1051_v9  ;;  %v832_v10 = vld [vmem:[#allocation5] sm:$0xff]   ;;  %v696_v15 = vld [vmem:[%s1365_s1] ss:$0 sm:$0xff]  ;;  %s706_s16 = sshll.u32 %s1033_s28, 1 }
  0x4f   : > { %719 = vmatpush3.bf16.msra.mxu0 %v831_v8  ;;  %v697_v17 = vld [vmem:[%s1366_s2] ss:$0 sm:$0xff]  ;;  %s1401_s19 = sld [smem:[#allocation20_spill]]  ;;  %s488_s20 = sadd.s32 %s1029_s27, %s706_s16  ;;  %vm452_vm2 = vcmask 257024  }
  0x50   : > { %v355_v2 = vsel %vm354_vm0, %v351_v1, 0.0  ;;  %720 = vmatprep.subr.bf16.mxu0 %v1051_v9  ;;  %s1250_s14 = sshll.u32 %s488_s20, 6  ;;  %s334_s10 = scalar_lea.vmem [#allocation7], %s1224_s6 }
  0x51   : > { %356 = vadd.xlane.f32.xlu0 %v355_v2  ;;  %s492_s21 = sshll.u32 %s334_s10, 4  ;;  %s1053_s28 = smov 96   ;;  %s493_s21 = int_to_ptr.vmem [resolvable:$true] %s492_s21 }
  0x52   : > { %s1403_s27 = sld [smem:[#allocation21_spill]]  ;;  %s467_s11 = scalar_lea.sflag [#allocation4], %s1221_s5 }
  0x53   : > { %721 = vmatpush3.bf16.msra.mxu0 %v832_v10  ;;  %s889_s12 = scalar_lea.vmem %s493_s21, 64  ;;  %s1054_s13 = smov [#allocation7]  }
  0x54   : > { %p890_p4 = scmp.ne.s32.totalorder %s493_s21, %s889_s12  ;;  %s893_s16 = sshll.u32 %s1054_s13, 4  ;;  %s894_s16 = int_to_ptr.vmem [resolvable:$false] %s893_s16 }
  0x55   : > { %v698_v21 = vld [vmem:[%s1401_s19] ss:$0 sm:$0xff]  ;;  %s895_s17 = scalar_lea.vmem %s894_s16, 128  ;;  %p896_p3 = scmp.lt.s32.totalorder %s493_s21, %s894_s16 }
  0x56   : > { %p891_p10 = pnand %p890_p4, %p1184_p12  ;;  %p897_p5 = scmp.lt.s32.totalorder %s895_s17, %s889_s12 }
  0x58   : > { %s1404_s15 = smov %s1403_s27  ;;  %s1257_s4 = scalar_lea.hbm %s1403_s27, %s1250_s14 }
  0x59   : > { %p892_p13 = pneg %p891_p10  ;;  %p898_p2 = por %p897_p5, %p896_p3 }
  0x5b   : > { %p899_p6 = pnand %p898_p2, %p892_p13 }
  0xda   : > { %v357_v3 = vpop.xlane.xlu0 %356 }
  0xdb   : > { %v359_v4 = vmul.f32 0.03125, %v357_v3 }
  0xdd   : > { %v360_v5 = vsub.f32 %v351_v1, %v359_v4 }
  0xdf   : > { %v361_v6 = vmul.f32 %v360_v5, %v360_v5 }
  0xe1   : > { %v362_v7 = vsel %vm354_vm0, %v361_v6, 0.0 }
  0xe2   : > { %363 = vadd.xlane.f32.xlu0 %v362_v7 }
 0x16b   : > { %v364_v11 = vpop.xlane.xlu0 %363 }
 0x16c   : > { %v365_v12 = vmul.f32 0.03125, %v364_v11 }
 0x16e   : > { %v366_v13 = vadd.f32 1e-05, %v365_v12 }
 0x170   : > { %833 = vrsqrt.f32 %v366_v13 }
 0x17d   : > { %v834_v14 = vpop.eup %833 }
 0x17e   : > { %v368_v16 = vmul.f32 %v834_v14, %v360_v5 }
 0x180   : > { %v375_v18 = vmul.f32 %v696_v15, %v368_v16 }
 0x182   : > { %v382_v19 = vadd.f32 %v697_v17, %v375_v18 }
 0x184   : > { %v383_v20 = vpack.c.bf16 %v382_v19, %v382_v19 }
 0x186   : > { %723 = vmatmul.mubr.msk.bf16.vlgmr.msra.gmra.mxu0 %vm354_vm0, %v383_v20 }
 0x246   : > { %v444_v22 = vpop.f32.mrf.mxu0 }
 0x247   : > { %v445_v23 = vadd.f32 %v698_v21, %v444_v22 }
 0x248   : > { %v724_v24 = vpop.f32.mrf.mxu0 }
 0x249   : > { %v450_v25 = vmul.f32 0.35355338, %v445_v23  ;;  %v714_v26 = vpack.c.bf16 %v445_v23, %v445_v23 }
 0x24a   : > { %v447_v27 = vpop.f32.mrf.mxu0 }
 0x24b   : > { %v451_v28 = vpack.c.bf16 %v450_v25, %v450_v25  ;;  %458 = vrot.lane.b32.xlu1 %v714_v26, %s1053_s28 }
 0x24c   : > { %v725_v29 = vpop.f32.mrf.mxu0 }
 0x24d   : > { %453 = vst.msk [vmem:[%s334_s10] sm:$0xf] %vm452_vm2, %v451_v28 }
 0x24e   : > { %902 = shalt.err (!%p899_p6)
}
 0x24f   : > { %s903_s18 = scalar_lea.hbm %s1257_s4, 64  ;;  %s907_s20 = scalar_lea.hbm %s1404_s15, 256 }
 0x250   : > { %p904_p7 = scmp.ne.s32.totalorder %s1257_s4, %s903_s18  ;;  %p908_p0 = scmp.lt.s32.totalorder %s1257_s4, %s1404_s15 }
 0x251   : > { %p909_p1 = scmp.lt.s32.totalorder %s907_s20, %s903_s18 }
 0x252   : > { %p905_p9 = pnand %p904_p7, %p1184_p12 }
 0x253   : > { %p910_p8 = por %p909_p1, %p908_p0 }
 0x254   : > { %p906_p11 = pneg %p905_p9 }
 0x256   : > { %p911_p4 = pnand %p910_p8, %p906_p11 }
 0x258   : > { %914 = shalt.err (!%p911_p4)
}
 0x259   : > { %732 = dma.vmem_to_hbm [thread:$0]  (%p1184_p12), %s493_s21, 64, %s1257_s4, %s467_s11  }
 0x25a   : > { %s1055_s23 = smov 64   ;;  %s471_s7 = sand.u32 1, %s1139_s9  }
 0x25b   : > { %462 = vrot.lane.b32.xlu1 %v714_v26, %s1055_s23  ;;  %s341_s27 = scalar_lea.vmem [#allocation8], %s1224_s6  ;;  %s1405_s17 = sld [smem:[#allocation22_spill]] }
 0x25c   : > { %s507_s12 = sshll.u32 %s341_s27, 4  ;;  %s348_s5 = scalar_lea.vmem [#allocation10], %s1224_s6  ;;  %s1285_s12 = int_to_ptr.vmem [resolvable:$true] %s507_s12 }
 0x25d   : > { %s522_s19 = sshll.u32 %s348_s5, 4  ;;  %s1291_s21 = scalar_lea.sflag [#allocation9], %s471_s7  ;;  %s523_s19 = int_to_ptr.vmem [resolvable:$true] %s522_s19 }
 0x25e   : > { %s915_s9 = scalar_lea.vmem %s1285_s12, 64  ;;  %s1056_s4 = smov [#allocation8]  }
 0x25f   : > { %p916_p10 = scmp.ne.s32.totalorder %s1285_s12, %s915_s9  ;;  %s919_s11 = sshll.u32 %s1056_s4, 4  ;;  %s920_s11 = int_to_ptr.vmem [resolvable:$false] %s919_s11 }
 0x260   : > { %s921_s20 = scalar_lea.vmem %s920_s11, 128  ;;  %p922_p5 = scmp.lt.s32.totalorder %s1285_s12, %s920_s11 }
 0x261   : > { %s1283_s18 = scalar_lea.hbm %s1405_s17, %s1250_s14  ;;  %p917_p13 = pnand %p916_p10, %p1184_p12 }
 0x262   : > { %p923_p2 = scmp.lt.s32.totalorder %s921_s20, %s915_s9 }
 0x263   : > { %p918_p3 = pneg %p917_p13 }
 0x264   : > { %p924_p6 = por %p923_p2, %p922_p5 }
 0x266   : > { %p925_p7 = pnand %p924_p6, %p918_p3 }
 0x2bd   : > { %v459_v30 = vpop.permute.xlu1 %458 }
 0x2be   : > { %461 = vst.msk [vmem:[%s341_s27] sm:$0xf] %vm452_vm2, %v459_v30 }
 0x2bf   : > { %928 = shalt.err (!%p925_p7)
}
 0x2c0   : > { %s929_s10 = scalar_lea.hbm %s1283_s18, 64  ;;  %s933_s7 = scalar_lea.hbm %s1405_s17, 256 }
 0x2c1   : > { %p930_p9 = scmp.ne.s32.totalorder %s1283_s18, %s929_s10  ;;  %p934_p1 = scmp.lt.s32.totalorder %s1283_s18, %s1405_s17 }
 0x2c2   : > { %p935_p8 = scmp.lt.s32.totalorder %s933_s7, %s929_s10 }
 0x2c3   : > { %p931_p11 = pnand %p930_p9, %p1184_p12 }
 0x2c4   : > { %p936_p4 = por %p935_p8, %p934_p1 }
 0x2c5   : > { %p932_p0 = pneg %p931_p11 }
 0x2c7   : > { %p937_p10 = pnand %p936_p4, %p932_p0 }
 0x2c9   : > { %940 = shalt.err (!%p937_p10)
}
 0x2ca   : > { %733 = dma.vmem_to_hbm [thread:$0]  (%p1184_p12), %s1285_s12, 64, %s1283_s18, %s1291_s21  }
 0x2cb   : > { %s1406_s4 = sld [smem:[#allocation23_spill]]  ;;  %s941_s20 = scalar_lea.vmem %s523_s19, 64 }
 0x2cc   : > { %p942_p13 = scmp.ne.s32.totalorder %s523_s19, %s941_s20  ;;  %s1057_s10 = smov [#allocation10]  }
 0x2cd   : > { %v463_v31 = vpop.permute.xlu1 %462  ;;  %s945_s28 = sshll.u32 %s1057_s10, 4  ;;  %s946_s28 = int_to_ptr.vmem [resolvable:$false] %s945_s28 }
 0x2ce   : > { %465 = vst.msk [vmem:[%s348_s5] sm:$0xf] %vm452_vm2, %v463_v31  ;;  %p943_p3 = pnand %p942_p13, %p1184_p12  ;;  %s947_s23 = scalar_lea.vmem %s946_s28, 128 }
 0x2cf   : > { %p948_p2 = scmp.lt.s32.totalorder %s523_s19, %s946_s28  ;;  %p949_p6 = scmp.lt.s32.totalorder %s947_s23, %s941_s20 }
 0x2d0   : > { %p944_p5 = pneg %p943_p3 }
 0x2d1   : > { %s520_s11 = scalar_lea.hbm %s1406_s4, %s1250_s14  ;;  %p950_p7 = por %p949_p6, %p948_p2 }
 0x2d3   : > { %p951_p9 = pnand %p950_p7, %p944_p5 }
 0x2d5   : > { %954 = shalt.err (!%p951_p9)
}
 0x2d6   : > { %s955_s14 = scalar_lea.hbm %s520_s11, 64  ;;  %s959_s18 = scalar_lea.hbm %s1406_s4, 256 }
 0x2d7   : > { %p956_p11 = scmp.ne.s32.totalorder %s520_s11, %s955_s14  ;;  %p960_p8 = scmp.lt.s32.totalorder %s520_s11, %s1406_s4 }
 0x2d8   : > { %p961_p4 = scmp.lt.s32.totalorder %s959_s18, %s955_s14 }
 0x2d9   : > { %p957_p0 = pnand %p956_p11, %p1184_p12 }
 0x2da   : > { %p962_p10 = por %p961_p4, %p960_p8 }
 0x2db   : > { %p958_p1 = pneg %p957_p0 }
 0x2dd   : > { %p963_p13 = pnand %p962_p10, %p958_p1 }
 0x2df   : > { %966 = shalt.err (!%p963_p13)
}
 0x2e0   : > { %734 = dma.vmem_to_hbm [thread:$0]  (%p1184_p12), %s523_s19, 64, %s520_s11, %s1291_s21  }
 0x2e1 PF: > { %s1407_s27 = sld [smem:[#allocation15_spill]]  ;;  %p759_p3 = scmp.ge.s32.totalorder %s1045_s8, 2 }
 0x2e2   : > { %s1408_s13 = sld [smem:[#allocation16_spill]] }
 0x2e7   : > { %s534_s16 = sand.u32 1, %s1407_s27  }
 0x2e8   : > { %p1409_p5 = scmp.ne.s32.totalorder %s1408_s13, 0  ;;  %s535_s9 = scalar_lea.sflag [#allocation4], %s534_s16 }
 0x2ea   : > { %p747_p2 = pnand %p759_p3, %p1409_p5 }
 0x2ec   : > { %p748_p6 = pneg %p747_p2 }
 0x2ee   : > { %1008 = dma.done.wait (%p748_p6), %s535_s9, 64  }
 0x2ef   : > { %1010 = vsyncadd (%p748_p6), %s535_s9, 4294967232  ;;  %s1410_s20 = sadd.s32 4294967294, %s1045_s8  }
 0x2f0   : > { %s543_s10 = sand.u32 1, %s1410_s20  }
 0x2f1   : > { %s544_s28 = scalar_lea.sflag [#allocation9], %s543_s10 }
 0x2f2   : > { %1012 = dma.done.wait (%p748_p6), %s544_s28, 128  }
 0x2f3   : > { %1014 = vsyncadd (%p748_p6), %s544_s28, 4294967168  ;;  %s28_s8 = sadd.s32 1, %s1045_s8   ;;  %s1411_s3 = smov %s1201_s24 }
 0x2f4   : > { %p25_p12 = scmp.ge.s32.totalorder %s28_s8, 6   ;;  %s1412_s19 = sld [smem:[#allocation17_spill]] }
 0x2f5   : > { %s1413_s24 = smov %s1021_s25  ;;  %s1414_s25 = smov %s1025_s26 }
 0x2f6   : > { %s1415_s26 = smov %s1411_s3  ;;  %s1416_s27 = smov %s1037_s29 }
 0x2f7   : > { %s1417_s28 = smov %s1041_s30  ;;  %s1419_s30 = smov %s1425_s22 }
 0x2f8   :  { %27 = sbr.rel (!%p25_p12) target bundleno = 16 (0x10), region = 121 }
 0x2fa   : > { %s1418_s29 = smov %s1412_s19 }
 0x2fd   :  { %558 = vsyncpa [#allocation3], 1 }
 0x2fe   :  { %560 = vsyncpa [#allocation3 + $0x1], 1 }
 0x2ff   :  { %561 = vsyncpa [#allocation6], 1 }
 0x300   :  { %562 = vsyncpa [#allocation4], 1 }
 0x301   :  { %564 = vsyncpa [#allocation4 + $0x1], 1 }
 0x302   :  { %565 = vsyncpa [#allocation9], 1 }
 0x303   :  { %567 = vsyncpa [#allocation9 + $0x1], 1 }

</bundles_post_ra>
